<compile_context>
chip_gen: v6e
topology: v6e:2x2x1
jax: 0.10.0
libtpu: 0.0.40
codegen_flags: <defaults>
</compile_context>

<pallas_src>
import functools

import jax
import jax.numpy as jnp
from jax import lax
from jax.experimental import pallas as pl
from jax.experimental.pallas import tpu as pltpu

LANES = 128
TARGET_BLOCK_BYTES = 2 << 20          # ~2 MiB per input block per pipeline buffer


def _mse_logits_kernel(p_ref, l_ref, o_ref, *, lo, hi,
                       valid_last_rows, need_mask):
    p = p_ref[...].astype(jnp.float32)
    lbl = l_ref[...].astype(jnp.float32)

    # sigmoid(x) * (hi - lo) + lo  ==  0.5*(hi-lo) * tanh(0.5*x) + 0.5*(hi+lo)
    # tanh is a single EUP op; sigmoid would cost exp + reciprocal + extra VALU.
    half_span = jnp.float32(0.5 * (hi - lo))
    mid = jnp.float32(0.5 * (hi + lo))
    scaled = half_span * jnp.tanh(jnp.float32(0.5) * p) + mid

    diff = scaled - lbl
    sq = diff * diff

    tr, lanes = p_ref.shape

    def _partial(x):
        # (tile_rows, 128) -> (8, 128): layout-compatible sublane-tile split +
        # plain vreg adds; the (8,128) store is unmasked (no vst.msk, no XLU).
        return jnp.sum(x.reshape(tr // 8, 8, lanes), axis=0)

    if need_mask:
        is_last = pl.program_id(0) == pl.num_programs(0) - 1

        @pl.when(is_last)
        def _():
            # Only the last block can contain out-of-bounds rows; the bound is
            # a small static Python int, so no 64-bit / global index math.
            row_ids = lax.broadcasted_iota(jnp.int32, (tr, lanes), 0)
            masked = jnp.where(row_ids < valid_last_rows, sq, jnp.float32(0.0))
            o_ref[...] = _partial(masked)[None]

        @pl.when(jnp.logical_not(is_last))
        def _():
            o_ref[...] = _partial(sq)[None]
    else:
        o_ref[...] = _partial(sq)[None]


def _vmem_capacity_bytes():
    try:
        return int(pltpu.get_tpu_info().vmem_capacity_bytes)
    except Exception:
        return 64 << 20                # conservative: v7x per-TensorCore VMEM


def mse_with_logits_loss(preds, labels, target_range=(-1.5, 1.5)):
    lo, hi = float(target_range[0]), float(target_range[1])
    assert preds.shape == labels.shape, "preds/labels must have matching shapes"

    n = preds.size
    p_flat = jnp.ravel(preds)          # free for contiguous inputs
    l_flat = jnp.ravel(labels)

    rows = n // LANES                  # 128-aligned prefix, in lane-rows
    use_kernel = rows >= 8             # below one sublane-tile, jnp is cheaper

    total = jnp.float32(0.0)
    tail_start = 0

    if use_kernel:
        itemsize = max(jnp.dtype(preds.dtype).itemsize,
                       jnp.dtype(labels.dtype).itemsize)
        vmem_cap = _vmem_capacity_bytes()

        # Per-input block budget: ~2 MiB, but keep 2 inputs x 2 pipeline
        # buffers comfortably inside the chip's VMEM (matters on v7x: 64 MiB).
        block_bytes = min(TARGET_BLOCK_BYTES, vmem_cap // 24)
        target_rows = max(8, block_bytes // (LANES * itemsize))
        tile_rows = (min(rows, target_rows) // 8) * 8    # multiple of 8 sublanes
        grid = pl.cdiv(rows, tile_rows)
        valid_last_rows = rows - (grid - 1) * tile_rows
        need_mask = valid_last_rows != tile_rows

        n_aligned = rows * LANES
        tail_start = n_aligned
        if n_aligned == n:
            p2d = p_flat.reshape(rows, LANES)
            l2d = l_flat.reshape(rows, LANES)
        else:
            # Only the (<128-element) tail is handled outside the kernel; no
            # full-tensor jnp.pad copy of both inputs.
            # TODO(synk): a memory_space=pl.ANY + manual-DMA path could stream
            # the unsliced HBM buffer directly and avoid this prefix slice.
            p2d = p_flat[:n_aligned].reshape(rows, LANES)
            l2d = l_flat[:n_aligned].reshape(rows, LANES)

        kernel = functools.partial(
            _mse_logits_kernel, lo=lo, hi=hi,
            valid_last_rows=valid_last_rows, need_mask=need_mask)

        # Double-buffered inputs + Mosaic elementwise temporaries need headroom
        # above the default scoped-VMEM limit (16 MiB on v5e) for large tiles;
        # 48 MiB (capped at 3/4 of physical) is safe on v5e/v6e/v7x.
        vmem_limit = int(min(48 << 20, (vmem_cap * 3) // 4))

        cost = pl.CostEstimate(
            flops=8 * n_aligned,
            transcendentals=n_aligned,
            bytes_accessed=2 * n_aligned * itemsize + grid * 8 * LANES * 4)

        partials = pl.pallas_call(
            kernel,
            out_shape=jax.ShapeDtypeStruct((grid, 8, LANES), jnp.float32),
            grid=(grid,),
            in_specs=[
                pl.BlockSpec((tile_rows, LANES), lambda i: (i, 0)),
                pl.BlockSpec((tile_rows, LANES), lambda i: (i, 0)),
            ],
            out_specs=pl.BlockSpec((1, 8, LANES), lambda i: (i, 0, 0)),
            compiler_params=pltpu.CompilerParams(
                # TODO(synk): on v7x, pltpu.CORE_PARALLEL here would shard the
                # grid across both TensorCores (~2x for this BW-bound kernel);
                # kept "parallel" for guaranteed-clean compile on all gens.
                dimension_semantics=("parallel",),
                vmem_limit_bytes=vmem_limit,
            ),
            cost_estimate=cost,
        )(p2d, l2d)

        total = jnp.sum(partials)

    if tail_start < n:
        tp = p_flat[tail_start:].astype(jnp.float32)
        tl = l_flat[tail_start:].astype(jnp.float32)
        t_scaled = jax.nn.sigmoid(tp) * jnp.float32(hi - lo) + jnp.float32(lo)
        total = total + jnp.sum((t_scaled - tl) ** 2)

    return total / jnp.float32(n)


def _reference(preds, labels, target_range=(-1.5, 1.5)):
    lo, hi = target_range
    p = jax.nn.sigmoid(preds.astype(jnp.float32)) * (hi - lo) + lo
    return jnp.mean((p - labels.astype(jnp.float32)) ** 2)


if __name__ == "__main__":
    key = jax.random.PRNGKey(0)
    k1, k2, k3, k4, k5, k6 = jax.random.split(key, 6)

    # 1) NCHW-style logits / targets (128-aligned fast path, no mask, no tail).
    preds = jax.random.normal(k1, (2, 4, 16, 16), dtype=jnp.float32)
    labels = jax.random.uniform(k2, (2, 4, 16, 16), dtype=jnp.float32,
                                minval=-1.5, maxval=1.5)
    loss = jax.block_until_ready(mse_with_logits_loss(preds, labels))
    ref = _reference(preds, labels)
    assert jnp.allclose(loss, ref, rtol=1e-5, atol=1e-6), (loss, ref)

    # 2) Tiny ragged tensor (< 128 elements -> pure-jnp fallback path).
    preds2 = jax.random.normal(k3, (3, 5, 7), dtype=jnp.float32)
    labels2 = jax.random.uniform(k4, (3, 5, 7), dtype=jnp.float32,
                                 minval=-1.5, maxval=1.5)
    loss2 = jax.block_until_ready(mse_with_logits_loss(preds2, labels2))
    ref2 = _reference(preds2, labels2)
    assert jnp.allclose(loss2, ref2, rtol=1e-5, atol=1e-6), (loss2, ref2)

    # 3) Ragged tensor exercising the partial-last-block mask + jnp tail path.
    preds3 = jax.random.normal(k5, (7, 13, 59), dtype=jnp.float32)
    labels3 = jax.random.uniform(k6, (7, 13, 59), dtype=jnp.float32,
                                 minval=-1.5, maxval=1.5)
    loss3 = jax.block_until_ready(mse_with_logits_loss(preds3, labels3))
    ref3 = _reference(preds3, labels3)
    assert jnp.allclose(loss3, ref3, rtol=1e-5, atol=1e-6), (loss3, ref3)

    print("KERNEL_OK")
</pallas_src>

<mosaic_0001>
module attributes {stable_mosaic.version = 11 : i64} {
  func.func @_mse_logits_kernel(%arg0: i32, %arg1: memref<16x128xf32, #tpu.memory_space<vmem>>, %arg2: memref<16x128xf32, #tpu.memory_space<vmem>>, %arg3: memref<1x8x128xf32, #tpu.memory_space<vmem>>) attributes {dimension_semantics = [#tpu.dimension_semantics<parallel>], iteration_bounds = array<i64: 1>, scalar_prefetch = 0 : i64, scratch_operands = 0 : i64, tpu.core_type = #tpu.core_type<tc>, window_params = [{transform_indices = @transform_0, window_bounds = array<i64: 16, 128>}, {transform_indices = @transform_1, window_bounds = array<i64: 16, 128>}, {transform_indices = @transform_2, window_bounds = array<i64: 1, 8, 128>}]} {
    %c0 = arith.constant 0 : index
    %c0_0 = arith.constant 0 : index
    %0 = vector.load %arg1[%c0, %c0_0] : memref<16x128xf32, #tpu.memory_space<vmem>>, vector<16x128xf32>
    %c0_1 = arith.constant 0 : index
    %c0_2 = arith.constant 0 : index
    %1 = vector.load %arg2[%c0_1, %c0_2] : memref<16x128xf32, #tpu.memory_space<vmem>>, vector<16x128xf32>
    %cst = arith.constant 5.000000e-01 : f32
    %2 = vector.broadcast %cst : f32 to vector<16x128xf32>
    %3 = arith.mulf %2, %0 : vector<16x128xf32>
    %4 = math.tanh %3 : vector<16x128xf32>
    %cst_3 = arith.constant 1.500000e+00 : f32
    %5 = vector.broadcast %cst_3 : f32 to vector<16x128xf32>
    %6 = arith.mulf %5, %4 : vector<16x128xf32>
    %cst_4 = arith.constant 0.000000e+00 : f32
    %7 = vector.broadcast %cst_4 : f32 to vector<16x128xf32>
    %8 = arith.addf %6, %7 : vector<16x128xf32>
    %9 = arith.subf %8, %1 : vector<16x128xf32>
    %10 = arith.mulf %9, %9 : vector<16x128xf32>
    %11 = vector.shape_cast %10 : vector<16x128xf32> to vector<2x8x128xf32>
    %cst_5 = arith.constant dense<0.000000e+00> : vector<8x128xf32>
    %12 = vector.multi_reduction <add>, %11, %cst_5 [0] : vector<2x8x128xf32> to vector<8x128xf32>
    %13 = vector.shape_cast %12 : vector<8x128xf32> to vector<1x8x128xf32>
    %c0_6 = arith.constant 0 : index
    %c0_7 = arith.constant 0 : index
    %c0_8 = arith.constant 0 : index
    %14 = vector.load %arg3[%c0_6, %c0_7, %c0_8] : memref<1x8x128xf32, #tpu.memory_space<vmem>>, vector<1x8x128xf32>
    tpu.vector_store %arg3[%c0_6, %c0_7, %c0_8], %13 {strides = array<i32>} : memref<1x8x128xf32, #tpu.memory_space<vmem>>, vector<1x8x128xf32>,
    return
  }
  func.func @transform_0(%arg0: i32) -> (i32, i32) {
    %c0_i32 = arith.constant 0 : i32
    %c0_i32_0 = arith.constant 0 : i32
    return %arg0, %c0_i32 : i32, i32
  }
  func.func @transform_1(%arg0: i32) -> (i32, i32) {
    %c0_i32 = arith.constant 0 : i32
    %c0_i32_0 = arith.constant 0 : i32
    return %arg0, %c0_i32 : i32, i32
  }
  func.func @transform_2(%arg0: i32) -> (i32, i32, i32) {
    %c0_i32 = arith.constant 0 : i32
    %c0_i32_0 = arith.constant 0 : i32
    %c0_i32_1 = arith.constant 0 : i32
    return %arg0, %c0_i32, %c0_i32_0 : i32, i32, i32
  }
}

</mosaic_0001>

<bundles_post_ra>
// kernel: tpu_custom_call.1
= control target key start
LH: loop header
LB: loop body
LE: loop exit
PB: predicated region body
PF: predicated region fallthrough
CT: control target
= control target key end

     0   :  { %7 = vsyncpa [#allocation3], 0  ;;  %s178_s0 = inlined_call_operand.hbm [shape: f32[16,128], index: 0, kind: input, shape index: {}]   ;;  %s179_s1 = inlined_call_operand.hbm [shape: f32[16,128], index: 1, kind: input, shape index: {}]   ;;  %s180_s2 = inlined_call_operand.hbm [shape: f32[1,8,128], index: 2, kind: output, shape index: {}]  }
   0x1   :  { %8 = vsyncpa [#allocation6], 0 }
   0x2   :  { %9 = vsyncpa [#allocation4], 0  ;;  %s149_s9 = smov [#allocation2]  }
   0x3   :  { %s15_s10 = sshll.u32 %s149_s9, 4  ;;  %s16_s10 = int_to_ptr.vmem [resolvable:$true] %s15_s10 }
   0x4   :  { %s91_s11 = scalar_lea.vmem %s16_s10, 256  ;;  %p96_p1 = scmp.lt.s32.totalorder %s16_s10, %s16_s10 }
   0x5   :  { %p92_p0 = scmp.ne.s32.totalorder %s16_s10, %s91_s11  ;;  %p97_p2 = scmp.lt.s32.totalorder %s91_s11, %s91_s11 }
   0x7   :  { %p98_p3 = por %p97_p2, %p96_p1 }
   0x9   :  { %p99_p4 = pnand %p98_p3, %p92_p0 }
   0xb   :  { %102 = shalt.err (!%p99_p4)
}
   0xc   :  { %s150_s12 = smov 128   ;;  %s151_s13 = smov 8  }
   0xd   :  { %21 = dma.hbm_to_vmem [thread:$0]  %s178_s0, 256, %s16_s10, [#allocation3], %s150_s12, %s150_s12, %s151_s13  }
   0xe   :  { %s152_s16 = smov [#allocation5]  }
   0xf   :  { %s27_s17 = sshll.u32 %s152_s16, 4  ;;  %s28_s17 = int_to_ptr.vmem [resolvable:$true] %s27_s17 }
  0x10   :  { %s111_s18 = scalar_lea.vmem %s28_s17, 256  ;;  %p116_p6 = scmp.lt.s32.totalorder %s28_s17, %s28_s17 }
  0x11   :  { %p112_p5 = scmp.ne.s32.totalorder %s28_s17, %s111_s18  ;;  %p117_p7 = scmp.lt.s32.totalorder %s111_s18, %s111_s18 }
  0x13   :  { %p118_p8 = por %p117_p7, %p116_p6 }
  0x15   :  { %p119_p9 = pnand %p118_p8, %p112_p5 }
  0x17   :  { %122 = shalt.err (!%p119_p9)
}
  0x18   :  { %33 = dma.hbm_to_vmem [thread:$0]  %s179_s1, 256, %s28_s17, [#allocation6], %s150_s12, %s150_s12, %s151_s13  }
  0x19   :  { %143 = dma.done.wait [#allocation3], 256  }
  0x1a   :  { %144 = vsyncadd [#allocation3], 4294967040 }
  0x1b   :  { %145 = dma.done.wait [#allocation6], 256  }
  0x1c   :  { %146 = vsyncadd [#allocation6], 4294967040  ;;  %v40_v0 = vld [vmem:[#allocation2] sm:$0xff]  ;;  %v41_v1 = vld [vmem:[#allocation2 + $0x8] sm:$0xff]  ;;  %s153_s0 = smov [#allocation7]  }
  0x1d   :  { %v44_v2 = vmul.f32 0.5, %v40_v0  ;;  %v45_v3 = vmul.f32 0.5, %v41_v1  ;;  %v42_v5 = vld [vmem:[#allocation5] sm:$0xff]  ;;  %v43_v7 = vld [vmem:[#allocation5 + $0x8] sm:$0xff]  ;;  %s64_s1 = sshll.u32 %s153_s0, 4  ;;  %s65_s1 = int_to_ptr.vmem [resolvable:$true] %s64_s1 }
  0x1e   :  { %s123_s21 = scalar_lea.vmem %s65_s1, 128  ;;  %p128_p11 = scmp.lt.s32.totalorder %s65_s1, %s65_s1 }
  0x1f   :  { %79 = vtanh.f32 %v44_v2  ;;  %p124_p10 = scmp.ne.s32.totalorder %s65_s1, %s123_s21  ;;  %p129_p12 = scmp.lt.s32.totalorder %s123_s21, %s123_s21 }
  0x20   :  { %81 = vtanh.f32 %v45_v3 }
  0x21   :  { %p130_p13 = por %p129_p12, %p128_p11 }
  0x23   :  { %p131_p0 = pnand %p130_p13, %p124_p10 }
  0x2c   :  { %v80_v4 = vpop.eup %79 }
  0x2d   :  { %v82_v6 = vpop.eup %81  ;;  %v48_v8 = vmul.f32 1.5, %v80_v4 }
  0x2e   :  { %v49_v9 = vmul.f32 1.5, %v82_v6 }
  0x2f   :  { %v52_v10 = vsub.f32 %v48_v8, %v42_v5 }
  0x30   :  { %v53_v11 = vsub.f32 %v49_v9, %v43_v7 }
  0x31   :  { %v54_v12 = vmul.f32 %v52_v10, %v52_v10 }
  0x32   :  { %v55_v13 = vmul.f32 %v53_v11, %v53_v11 }
  0x34   :  { %v56_v14 = vadd.f32 %v55_v13, %v54_v12 }
  0x36   :  { %57 = vst [vmem:[#allocation7] sm:$0xff] %v56_v14 }
  0x37   :  { %134 = shalt.err (!%p131_p0)
}
  0x38   :  { %67 = dma.vmem_to_hbm [thread:$0]  %s65_s1, 128, %s180_s2, [#allocation4]  }
  0x39   :  { %147 = dma.done.wait [#allocation4], 128  }
  0x3a   :  { %148 = vsyncadd [#allocation4], 4294967168 }
  0x3b   :  { %71 = vsyncpa [#allocation3], 1 }
  0x3c   :  { %72 = vsyncpa [#allocation6], 1 }
  0x3d   :  { %73 = vsyncpa [#allocation4], 1 }

</bundles_post_ra>
